<compile_context>
chip_gen: v7x
topology: tpu7x:2x2x1
jax: 0.10.0
libtpu: 0.0.40
codegen_flags: <defaults>
</compile_context>

<pallas_src>
import functools

import jax
import jax.numpy as jnp
from jax.experimental import pallas as pl
from jax.experimental.pallas import tpu as pltpu

_LANES = 128


def _physical_vmem_bytes():
    """Per-core VMEM capacity, with a v7x-safe fallback."""
    try:
        return int(pltpu.get_tpu_info().vmem_capacity_bytes)
    except Exception:
        return 64 * 1024 * 1024


def _channel_conv(mean, w_ref, k_size):
    """Exact Conv1d(1, 1, k, padding=(k-1)//2, bias=False) across the last axis.

    mean : (..., Cpad) f32 value; w_ref : (k,) f32 SMEM ref.
    Implemented as k roll-and-FMA steps (XLU + VPU), no (C, C) matrix.
    """
    pad = (k_size - 1) // 2
    cpad = mean.shape[-1]
    ax = mean.ndim - 1
    lane = jax.lax.broadcasted_iota(jnp.int32, mean.shape, ax)
    y = w_ref[pad] * mean                      # centre tap, shift 0
    for j in range(k_size):
        s = pad - j                            # y[c] += w[j] * mean[c - s]
        if s == 0:
            continue
        rolled = pltpu.roll(mean, shift=s % cpad, axis=ax)
        valid = (lane >= s) if s > 0 else (lane < cpad + s)
        y = y + w_ref[j] * jnp.where(valid, rolled, 0.0)
    return y


# ---------------------------------------------------------------------------
# Fused single-kernel path: whole (N, Cpad) plane per batch block in VMEM.
# ---------------------------------------------------------------------------
def _eca_fused_kernel(w_ref, x_ref, o_ref, *, n_tokens, k_size):
    # w_ref : (k,) f32 in SMEM
    # x_ref : (Bblk, N, Cpad), o_ref same.
    mean = jnp.sum(x_ref[...], axis=1, dtype=jnp.float32) * (1.0 / n_tokens)
    gate = jax.nn.sigmoid(_channel_conv(mean, w_ref, k_size))        # (Bblk, Cpad)
    o_ref[...] = x_ref[...] * gate.astype(o_ref.dtype)[:, None, :]


# ---------------------------------------------------------------------------
# Split fallback path (plane does not fit): gate kernel + streaming scale.
# ---------------------------------------------------------------------------
def _eca_gate_kernel(w_ref, x_ref, gate_ref, *, n_tokens, k_size):
    # grid = (B, N // tn); token axis is a reduction ("arbitrary").
    # gate_ref : (1, 1, Cpad) f32, output-resident accumulator across n tiles.
    nt = pl.program_id(1)

    @pl.when(nt == 0)
    def _():
        gate_ref[...] = jnp.zeros_like(gate_ref)

    gate_ref[...] += jnp.sum(x_ref[...], axis=1, keepdims=True, dtype=jnp.float32)

    @pl.when(nt == pl.num_programs(1) - 1)
    def _():
        mean = gate_ref[...] * (1.0 / n_tokens)
        gate_ref[...] = jax.nn.sigmoid(_channel_conv(mean, w_ref, k_size))


def _eca_scale_kernel(x_ref, gate_ref, o_ref):
    # x_ref/o_ref : (1, tn, Cpad); gate_ref : (1, 1, Cpad) f32.
    o_ref[...] = x_ref[...] * gate_ref[...].astype(o_ref.dtype)


# ---------------------------------------------------------------------------
# Wrapper
# ---------------------------------------------------------------------------
def eca_layer_1d_pallas(x, conv_w, k_size=3, block_b=None,
                        force_split=False, split_tn=None):
    """x: (B, N, C).  conv_w: Conv1d(1,1,k) weight (any shape with k elements).

    Returns x * sigmoid(conv1d(mean_over_tokens(x))) with PyTorch semantics.
    """
    B, N, C = x.shape
    w = jnp.asarray(conv_w, jnp.float32).reshape(-1)
    assert w.shape[0] == k_size, "conv weight must have k_size taps"

    # Lane-dense layout: pad channels up to a multiple of 128 so stores are
    # full-width vst (not masked vst.msk).  Padded channels have mean 0, which
    # matches Conv1d's zero padding exactly; padded outputs are sliced away.
    Cpad = ((C + _LANES - 1) // _LANES) * _LANES
    x_in = x if Cpad == C else jnp.pad(x, ((0, 0), (0, 0), (0, Cpad - C)))

    itemsize = x.dtype.itemsize
    phys = _physical_vmem_bytes()
    # ~96 MiB on v5e/v6e (128 MiB physical), ~48 MiB on v7x (64 MiB physical).
    vmem_limit = int(min((phys * 3) // 4, 100 * 1024 * 1024))
    budget = (vmem_limit * 9) // 10

    def fused_bytes(bb):
        tile = bb * N * Cpad * itemsize
        inter = 8 * bb * Cpad * 4            # mean / gate / iota / roll temps
        return 4 * tile + inter              # (in + out) x double buffer

    use_split = force_split or fused_bytes(1) > budget

    w_spec = pl.BlockSpec(memory_space=pltpu.MemorySpace.SMEM)

    if not use_split:
        if block_b is None:
            cap = max(1, B // 2) if B >= 2 else 1   # grid >= 2 for v7x megacore
            block_b = 1
            for d in range(1, B + 1):
                if B % d == 0 and d <= cap and fused_bytes(d) <= budget:
                    block_b = d
        assert B % block_b == 0, "block_b must divide the batch size"
        grid = (B // block_b,)

        out_p = pl.pallas_call(
            functools.partial(_eca_fused_kernel, n_tokens=N, k_size=k_size),
            out_shape=jax.ShapeDtypeStruct((B, N, Cpad), x.dtype),
            grid_spec=pltpu.PrefetchScalarGridSpec(
                num_scalar_prefetch=0,
                grid=grid,
                in_specs=[
                    w_spec,
                    pl.BlockSpec((block_b, N, Cpad), lambda b: (b, 0, 0)),
                ],
                out_specs=pl.BlockSpec((block_b, N, Cpad), lambda b: (b, 0, 0)),
            ),
            compiler_params=pltpu.CompilerParams(
                dimension_semantics=("parallel",),
                vmem_limit_bytes=vmem_limit,
            ),
            cost_estimate=pl.CostEstimate(
                flops=2 * B * N * Cpad + 2 * B * Cpad * k_size,
                transcendentals=B * Cpad,
                bytes_accessed=2 * B * N * Cpad * itemsize,
            ),
        )(w, x_in)
    else:
        # N-tiled fallback: (a) gate kernel (mean -> conv -> sigmoid) with the
        # token axis as a reduction, (b) streaming x * gate kernel.
        def split_bytes(tn):
            return 4 * tn * Cpad * itemsize + 8 * Cpad * 4

        if split_tn is None:
            candidates = [d for d in range(1, N + 1)
                          if N % d == 0 and (d % 8 == 0 or d == N)]
            fitting = [d for d in candidates if split_bytes(d) <= budget]
            tn = max(fitting) if fitting else min(candidates)
        else:
            tn = split_tn
            assert N % tn == 0 and (tn % 8 == 0 or tn == N)
        grid = (B, N // tn)

        gate = pl.pallas_call(
            functools.partial(_eca_gate_kernel, n_tokens=N, k_size=k_size),
            out_shape=jax.ShapeDtypeStruct((B, 1, Cpad), jnp.float32),
            grid_spec=pltpu.PrefetchScalarGridSpec(
                num_scalar_prefetch=0,
                grid=grid,
                in_specs=[
                    w_spec,
                    pl.BlockSpec((1, tn, Cpad), lambda b, n: (b, n, 0)),
                ],
                out_specs=pl.BlockSpec((1, 1, Cpad), lambda b, n: (b, 0, 0)),
            ),
            compiler_params=pltpu.CompilerParams(
                dimension_semantics=("parallel", "arbitrary"),
                vmem_limit_bytes=vmem_limit,
            ),
        )(w, x_in)

        out_p = pl.pallas_call(
            _eca_scale_kernel,
            out_shape=jax.ShapeDtypeStruct((B, N, Cpad), x.dtype),
            grid_spec=pltpu.PrefetchScalarGridSpec(
                num_scalar_prefetch=0,
                grid=grid,
                in_specs=[
                    pl.BlockSpec((1, tn, Cpad), lambda b, n: (b, n, 0)),
                    pl.BlockSpec((1, 1, Cpad), lambda b, n: (b, 0, 0)),
                ],
                out_specs=pl.BlockSpec((1, tn, Cpad), lambda b, n: (b, n, 0)),
            ),
            compiler_params=pltpu.CompilerParams(
                dimension_semantics=("parallel", "parallel"),
                vmem_limit_bytes=vmem_limit,
            ),
        )(x_in, gate)

    return out_p if Cpad == C else out_p[:, :, :C]


def _eca_ref(x, w, k_size):
    """Plain-JAX reference of the PyTorch eca_layer_1d forward."""
    B, N, C = x.shape
    pad = (k_size - 1) // 2
    mean = jnp.mean(x.astype(jnp.float32), axis=1)            # (B, C)
    mp = jnp.pad(mean, ((0, 0), (pad, pad)))
    y = jnp.zeros_like(mean)
    for j in range(k_size):
        y = y + w[j] * mp[:, j:j + C]
    gate = jax.nn.sigmoid(y)
    return (x * gate[:, None, :]).astype(x.dtype)


if __name__ == "__main__":
    key = jax.random.PRNGKey(0)
    k1, k2, k3, k4 = jax.random.split(key, 4)

    # Case 1: lane-aligned channels, fused single-kernel path (grid >= 2).
    B, N, C, ks = 4, 64, 256, 3
    x = jax.random.normal(k1, (B, N, C), jnp.float32)
    conv_w = jax.random.normal(k2, (1, 1, ks), jnp.float32) * 0.5
    out = eca_layer_1d_pallas(x, conv_w, k_size=ks)
    jax.block_until_ready(out)
    ref = _eca_ref(x, jnp.asarray(conv_w).reshape(-1), ks)
    assert out.shape == (B, N, C)
    assert jnp.allclose(out, ref, atol=1e-5, rtol=1e-5)

    # Case 2: non-multiple-of-128 channels (padding path) and k_size = 5.
    B2, N2, C2, ks2 = 2, 48, 96, 5
    x2 = jax.random.normal(k3, (B2, N2, C2), jnp.float32)
    conv_w2 = jax.random.normal(k4, (1, 1, ks2), jnp.float32) * 0.5
    out2 = eca_layer_1d_pallas(x2, conv_w2, k_size=ks2)
    jax.block_until_ready(out2)
    ref2 = _eca_ref(x2, jnp.asarray(conv_w2).reshape(-1), ks2)
    assert jnp.allclose(out2, ref2, atol=1e-5, rtol=1e-5)

    # Case 3: force the N-tiled split fallback (used when one (N, C) plane
    # does not fit in VMEM), with a multi-step token reduction.
    out3 = eca_layer_1d_pallas(x, conv_w, k_size=ks, force_split=True, split_tn=16)
    jax.block_until_ready(out3)
    assert jnp.allclose(out3, ref, atol=1e-5, rtol=1e-5)

    print("KERNEL_OK")
</pallas_src>

<mosaic_0001>
module attributes {stable_mosaic.version = 11 : i64} {
  func.func @_eca_fused_kernel(%arg0: i32, %arg1: memref<3xf32, #tpu.memory_space<smem>>, %arg2: memref<2x64x256xf32, #tpu.memory_space<vmem>>, %arg3: memref<2x64x256xf32, #tpu.memory_space<vmem>>) attributes {dimension_semantics = [#tpu.dimension_semantics<parallel>], iteration_bounds = array<i64: 2>, scalar_prefetch = 0 : i64, scratch_operands = 0 : i64, tpu.core_type = #tpu.core_type<tc>, window_params = [{transform_indices = @transform_0, window_bounds = array<i64: 3>}, {transform_indices = @transform_1, window_bounds = array<i64: 2, 64, 256>}, {transform_indices = @transform_2, window_bounds = array<i64: 2, 64, 256>}]} {
    %c0 = arith.constant 0 : index
    %c0_0 = arith.constant 0 : index
    %c0_1 = arith.constant 0 : index
    %0 = vector.load %arg2[%c0, %c0_0, %c0_1] : memref<2x64x256xf32, #tpu.memory_space<vmem>>, vector<2x64x256xf32>
    %cst = arith.constant dense<0.000000e+00> : vector<2x256xf32>
    %1 = vector.multi_reduction <add>, %0, %cst [1] : vector<2x64x256xf32> to vector<2x256xf32>
    %cst_2 = arith.constant 1.562500e-02 : f32
    %2 = vector.broadcast %cst_2 : f32 to vector<2x256xf32>
    %3 = arith.mulf %1, %2 : vector<2x256xf32>
    %4 = tpu.iota {dimensions = array<i32: 1>} : vector<2x256xi32>
    %c1 = arith.constant 1 : index
    %5 = memref.load %arg1[%c1] : memref<3xf32, #tpu.memory_space<smem>>
    %6 = vector.broadcast %5 : f32 to vector<2x256xf32>
    %7 = arith.mulf %6, %3 : vector<2x256xf32>
    %c1_i32 = arith.constant 1 : i32
    %8 = tpu.dynamic_rotate %3 by %c1_i32 dim 1 : vector<2x256xf32>, i32 -> vector<2x256xf32>
    %c1_i32_3 = arith.constant 1 : i32
    %9 = vector.broadcast %c1_i32_3 : i32 to vector<2x256xi32>
    %10 = arith.cmpi sge, %4, %9 : vector<2x256xi32>
    %c0_4 = arith.constant 0 : index
    %11 = memref.load %arg1[%c0_4] : memref<3xf32, #tpu.memory_space<smem>>
    %cst_5 = arith.constant 0.000000e+00 : f32
    %12 = vector.broadcast %cst_5 : f32 to vector<2x256xf32>
    %13 = arith.select %10, %8, %12 : vector<2x256xi1>, vector<2x256xf32>
    %14 = vector.broadcast %11 : f32 to vector<2x256xf32>
    %15 = arith.mulf %14, %13 : vector<2x256xf32>
    %16 = arith.addf %7, %15 : vector<2x256xf32>
    %c255_i32 = arith.constant 255 : i32
    %17 = tpu.dynamic_rotate %3 by %c255_i32 dim 1 : vector<2x256xf32>, i32 -> vector<2x256xf32>
    %c255_i32_6 = arith.constant 255 : i32
    %18 = vector.broadcast %c255_i32_6 : i32 to vector<2x256xi32>
    %19 = arith.cmpi slt, %4, %18 : vector<2x256xi32>
    %c2 = arith.constant 2 : index
    %20 = memref.load %arg1[%c2] : memref<3xf32, #tpu.memory_space<smem>>
    %cst_7 = arith.constant 0.000000e+00 : f32
    %21 = vector.broadcast %cst_7 : f32 to vector<2x256xf32>
    %22 = arith.select %19, %17, %21 : vector<2x256xi1>, vector<2x256xf32>
    %23 = vector.broadcast %20 : f32 to vector<2x256xf32>
    %24 = arith.mulf %23, %22 : vector<2x256xf32>
    %25 = arith.addf %16, %24 : vector<2x256xf32>
    %26 = arith.negf %25 : vector<2x256xf32>
    %27 = math.exp %26 : vector<2x256xf32>
    %cst_8 = arith.constant 1.000000e+00 : f32
    %28 = vector.broadcast %cst_8 : f32 to vector<2x256xf32>
    %29 = arith.addf %28, %27 : vector<2x256xf32>
    %30 = arith.divf %28, %29 : vector<2x256xf32>
    %c0_9 = arith.constant 0 : index
    %c0_10 = arith.constant 0 : index
    %c0_11 = arith.constant 0 : index
    %31 = vector.load %arg2[%c0_9, %c0_10, %c0_11] : memref<2x64x256xf32, #tpu.memory_space<vmem>>, vector<2x64x256xf32>
    %32 = vector.shape_cast %30 : vector<2x256xf32> to vector<2x1x256xf32>
    %33 = vector.broadcast %32 : vector<2x1x256xf32> to vector<2x64x256xf32>
    %34 = arith.mulf %31, %33 : vector<2x64x256xf32>
    %c0_12 = arith.constant 0 : index
    %c0_13 = arith.constant 0 : index
    %c0_14 = arith.constant 0 : index
    %35 = vector.load %arg3[%c0_12, %c0_13, %c0_14] : memref<2x64x256xf32, #tpu.memory_space<vmem>>, vector<2x64x256xf32>
    tpu.vector_store %arg3[%c0_12, %c0_13, %c0_14], %34 {strides = array<i32>} : memref<2x64x256xf32, #tpu.memory_space<vmem>>, vector<2x64x256xf32>,
    return
  }
  func.func @transform_0(%arg0: i32) -> i32 {
    %c0_i32 = arith.constant 0 : i32
    %c0_i32_0 = arith.constant 0 : i32
    return %c0_i32 : i32
  }
  func.func @transform_1(%arg0: i32) -> (i32, i32, i32) {
    %c0_i32 = arith.constant 0 : i32
    %c0_i32_0 = arith.constant 0 : i32
    %c0_i32_1 = arith.constant 0 : i32
    return %arg0, %c0_i32, %c0_i32_0 : i32, i32, i32
  }
  func.func @transform_2(%arg0: i32) -> (i32, i32, i32) {
    %c0_i32 = arith.constant 0 : i32
    %c0_i32_0 = arith.constant 0 : i32
    %c0_i32_1 = arith.constant 0 : i32
    return %arg0, %c0_i32, %c0_i32_0 : i32, i32, i32
  }
}

</mosaic_0001>

<bundles_post_ra>
// kernel: tpu_custom_call.1
= control target key start
LH: loop header
LB: loop body
LE: loop exit
PB: predicated region body
PF: predicated region fallthrough
CT: control target
= control target key end

     0   :  { %7 = vsyncpa [#allocation5], 0  ;;  %s1178_s0 = inlined_call_operand.hbm [shape: f32[3], index: 0, kind: input, shape index: {}]   ;;  %s1179_s1 = inlined_call_operand.hbm [shape: f32[4,64,256], index: 1, kind: input, shape index: {}]   ;;  %s1180_s2 = inlined_call_operand.hbm [shape: f32[4,64,256], index: 2, kind: output, shape index: {}]  }
   0x1   :  { %8 = vsyncpa [#allocation3], 0 }
   0x2   :  { %10 = vsyncpa [#allocation3 + $0x1], 0 }
   0x3   :  { %11 = vsyncpa [#allocation4], 0 }
   0x4   :  { %13 = vsyncpa [#allocation4 + $0x1], 0  ;;  %s787_s9 = smov 0   ;;  %s789_s10 = smov 0  }
   0x5   :  { %s791_s11 = smov 0   ;;  %s793_s12 = smov 0  }
   0x6 LB: > { %s808_s13 = sadd.s32 4294967295, %s761_s12   ;;  %s541_s14 = sadd.s32 4294967294, %s761_s12   ;;  %s761_s12 = sphi %s793_s12, %s1203_s12   ;;  %s757_s11 = sphi %s791_s11, %s1202_s11   ;;  %s753_s10 = sphi %s789_s10, %s1201_s10   ;;  %s749_s9 = sphi %s787_s9, %s1200_s9  }
   0x7   : > { %s812_s15 = sadd.s32 1, %s761_s12   ;;  %s47_s16 = sadd.s32 1, %s757_s11 }
   0x8   : > { %s44_s17 = ssub.s32 %s761_s12, %s812_s15  ;;  %p54_p0 = scmp.ne.s32.totalorder %s757_s11, %s753_s10 }
   0x9   : > { %p45_p1 = scmp.eq.s32.totalorder %s44_s17, 0  ;;  %p55_p2 = scmp.eq.s32.totalorder %s761_s12, 0 }
   0xa   : > { %p60_p3 = scmp.ne.s32.totalorder %s753_s10, %s749_s9  ;;  %p1181_p4 = scmp.eq.s32.totalorder %s808_s13, 0 }
   0xb   : > { %s824_s18 = scalar_select %p45_p1, %s757_s11, %s47_s16  }
   0xc   : > { %p826_p5 = por %p55_p2, %p54_p0  ;;  %p832_p6 = por %p1181_p4, %p60_p3 }
   0xd   : > { %p84_p7 = scmp.eq.s32.totalorder %s808_s13, 1  ;;  %p90_p8 = scmp.eq.s32.totalorder %s541_s14, 1 }
   0xe   : > { %s1186_s20 = scalar_select %p832_p6, 1, 0 }
   0xf   : > { %p542_p9 = scmp.ge.s32.totalorder %s761_s12, 1  ;;  %p97_p10 = scmp.lt.s32.totalorder %s761_s12, 3 }
  0x10   : > { %p839_p11 = por %p84_p7, %p54_p0  ;;  %p843_p12 = por %p90_p8, %p60_p3 }
  0x11   : > { %p847_p13 = pnand %p542_p9, %p97_p10  ;;  %p590_p4 = scmp.lt.s32.totalorder %s761_s12, 2 }
  0x12   : > { %s1187_s21 = scalar_select %p839_p11, 1, 0 }
  0x13   : > { %s1188_s22 = scalar_select %p843_p12, 1, 0 }
  0x14   : > { %p577_p2 = pneg %p847_p13  ;;  %s119_s24 = sand.u32 1, %s757_s11  }
  0x15   : > { %s566_s25 = sshll.u32 %s761_s12, 12  ;;  %p1190_p6 = scmp.eq.s32.totalorder %s808_s13, 0 }
  0x16   : > { %p861_p7 = pnand %p590_p4, %p826_p5  ;;  %s545_s27 = sshll.u32 %s119_s24, 8 }
  0x17   : > { %p578_p0 = pnand %p577_p2, %p1190_p6  ;;  %s648_s30 = scalar_lea.hbm %s1178_s0, 16 }
  0x18   : > { %p649_p3 = scmp.ne.s32.totalorder %s1178_s0, %s648_s30  ;;  %p655_p6 = scmp.lt.u32.totalorder %s648_s30, %s1178_s0 }
  0x19   : > { %p650_p8 = pneg %p578_p0 }
  0x1b   : > { %p651_p9 = pnand %p650_p8, %p649_p3 }
  0x1d   : > { %p652_p10 = pneg %p651_p9 }
  0x1f   : > { %p657_p4 = pnand %p655_p6, %p652_p10 }
  0x21   : > { %660 = shalt.err (!%p657_p4)
}
  0x22   : > { %s763_s7 = smov [#allocation2]   ;;  %s880_s19 = scalar_lea.hbm %s1179_s1, %s566_s25 }
  0x23   : > { %580 = dma.hbm_to_smem (!%p578_p0), %s1178_s0, 16, %s763_s7, [#allocation5]  }
  0x24   : > { %s123_s28 = scalar_lea.vmem [#allocation6], %s545_s27  ;;  %s884_s30 = scalar_lea.sflag [#allocation3], %s119_s24 }
  0x25   : > { %s131_s29 = sshll.u32 %s123_s28, 4  ;;  %s661_s3 = scalar_lea.hbm %s880_s19, 4096  ;;  %s882_s29 = int_to_ptr.vmem [resolvable:$true] %s131_s29 }
  0x26   : > { %p662_p5 = scmp.ne.s32.totalorder %s880_s19, %s661_s3  ;;  %p663_p2 = pneg %p861_p7 }
  0x27   : > { %s666_s5 = scalar_lea.hbm %s1179_s1, 8192  ;;  %p667_p8 = scmp.lt.u32.totalorder %s880_s19, %s1179_s1 }
  0x28   : > { %p664_p0 = pnand %p663_p2, %p662_p5  ;;  %p668_p9 = scmp.lt.u32.totalorder %s666_s5, %s661_s3 }
  0x29   : > { %p670_p6 = scmp.lt.u32.totalorder %s661_s3, %s880_s19 }
  0x2a   : > { %p665_p3 = pneg %p664_p0  ;;  %p669_p10 = por %p668_p9, %p667_p8 }
  0x2c   : > { %p671_p4 = por %p670_p6, %p669_p10 }
  0x2e   : > { %p672_p1 = pnand %p671_p4, %p665_p3 }
  0x30   : > { %675 = shalt.err (!%p672_p1)
}
  0x31   : > { %s676_s24 = scalar_lea.vmem %s882_s29, 4096  ;;  %s764_s27 = smov [#allocation6]  }
  0x32   : > { %p677_p5 = scmp.ne.s32.totalorder %s882_s29, %s676_s24  ;;  %s681_s8 = sshll.u32 %s764_s27, 4  ;;  %s682_s8 = int_to_ptr.vmem [resolvable:$false] %s681_s8 }
  0x33   : > { %s683_s14 = scalar_lea.vmem %s682_s8, 8192  ;;  %p684_p11 = scmp.lt.s32.totalorder %s882_s29, %s682_s8 }
  0x34   : > { %p679_p0 = pnand %p677_p5, %p663_p2  ;;  %p685_p8 = scmp.lt.s32.totalorder %s683_s14, %s676_s24 }
  0x36   : > { %p680_p12 = pneg %p679_p0  ;;  %p686_p9 = por %p685_p8, %p684_p11 }
  0x38   : > { %p687_p10 = pnand %p686_p9, %p680_p12 }
  0x3a   : > { %690 = shalt.err (!%p687_p10)
}
  0x3b   : > { %s765_s16 = smov 256   ;;  %s766_s17 = smov 16  }
  0x3c   : > { %584 = dma.hbm_to_vmem [thread:$0]  (!%p861_p7), %s880_s19, 4096, %s882_s29, %s884_s30, %s765_s16, %s765_s16, %s766_s17  }
  0x3d   : > { %143 = sbr.rel (%p847_p13) target bundleno = 296 (0x128), region = 28 }
  0x44   : > { %p1192_p1 = scmp.eq.s32.totalorder %s808_s13, 0 }
  0x46   : > { %736 = dma.done.wait (%p1192_p1), [#allocation5], 16   ;;  %p1193_p2 = pmov %p1192_p1 }
  0x47   : > { %s919_s28 = sand.u32 1, %s753_s10   ;;  %p1194_p11 = scmp.ne.s32.totalorder %s1186_s20, 0 }
  0x48   : > { %738 = vsyncadd (%p1193_p2), [#allocation5], 4294967280  ;;  %s551_s3 = sshll.u32 %s919_s28, 8  ;;  %s150_s25 = scalar_lea.sflag [#allocation3], %s919_s28 }
  0x49   : > { %s925_s26 = scalar_lea.vmem [#allocation6], %s551_s3 }
  0x4a   : > { %740 = dma.done.wait (%p1194_p11), %s150_s25, 4096  }
  0x4b   : > { %742 = vsyncadd (%p1194_p11), %s150_s25, 4294963200 }
  0x4c   : > { %158 = sfence }
  0x4d   : > { %v932_v0 = vld [vmem:[%s925_s26] sm:$0xff]  ;;  %v935_v1 = vld [vmem:[%s925_s26 + $0x10] sm:$0xff]  ;;  %v965_v13 = vld [vmem:[%s925_s26 + $0x8] sm:$0xff]  ;;  %vm278_vm0 = vcmask 1041409   ;;  %s767_s20 = smov 127   ;;  %s768_s23 = smov 1  }
  0x4e   : > { %v938_v2 = vld [vmem:[%s925_s26 + $0x20] sm:$0xff]  ;;  %v209_v3 = vadd.f32 %v935_v1, %v932_v0  ;;  %v943_v4 = vld [vmem:[%s925_s26 + $0x30] sm:$0xff]  ;;  %v968_v14 = vld [vmem:[%s925_s26 + $0x18] sm:$0xff]  ;;  %s553_s19 = sld [smem:[#allocation2 + $0x1]]  ;;  %s292_s29 = sld [smem:[#allocation2]] }
  0x4f   : > { %v946_v5 = vld [vmem:[%s925_s26 + $0x80] sm:$0xff]  ;;  %v949_v6 = vld [vmem:[%s925_s26 + $0x90] sm:$0xff]  ;;  %v975_v17 = vld [vmem:[%s925_s26 + $0x28] sm:$0xff]  ;;  %v222_v18 = vadd.f32 %v968_v14, %v965_v13  ;;  %s554_s30 = sld [smem:[#allocation2 + $0x2]]  ;;  %s1071_s4 = scalar_lea.vmem [#allocation7], %s551_s3 }
  0x50   : > { %v952_v7 = vld [vmem:[%s925_s26 + $0xa0] sm:$0xff]  ;;  %v210_v8 = vadd.f32 %v209_v3, %v938_v2  ;;  %v235_v10 = vadd.f32 %v949_v6, %v946_v5  ;;  %v961_v11 = vld [vmem:[%s925_s26 + $0xb0] sm:$0xff]  ;;  %v987_v22 = vld [vmem:[%s925_s26 + $0x38] sm:$0xff]  ;;  %s568_s5 = sshll.u32 %s808_s13, 12  ;;  %s456_s6 = sshll.u32 %s1071_s4, 4  ;;  %s1122_s6 = int_to_ptr.vmem [resolvable:$true] %s456_s6 }
  0x51   : > { %v956_v9 = vld [vmem:[%s925_s26 + $0x40] sm:$0xff]  ;;  %v971_v15 = vld [vmem:[%s925_s26 + $0x50] sm:$0xff]  ;;  %v991_v24 = vld [vmem:[%s925_s26 + $0x88] sm:$0xff]  ;;  %v223_v27 = vadd.f32 %v222_v18, %v975_v17  ;;  %s1120_s24 = scalar_lea.hbm %s1180_s2, %s568_s5  ;;  %s442_s27 = scalar_lea.sflag [#allocation4], %s919_s28 }
  0x52   : > { %v211_v12 = vadd.f32 %v210_v8, %v943_v4  ;;  %v236_v16 = vadd.f32 %v235_v10, %v952_v7  ;;  %v980_v19 = vld [vmem:[%s925_s26 + $0x60] sm:$0xff]  ;;  %v994_v25 = vld [vmem:[%s925_s26 + $0x98] sm:$0xff]  ;;  %v997_v26 = vld [vmem:[%s925_s26 + $0xa8] sm:$0xff]  ;;  %s691_s8 = scalar_lea.vmem %s1122_s6, 4096  ;;  %p1197_p13 = scmp.ne.s32.totalorder %s1187_s21, 0 }
  0x53   : > { %v983_v20 = vld [vmem:[%s925_s26 + $0xc0] sm:$0xff]  ;;  %v1001_v28 = vld [vmem:[%s925_s26 + $0xd0] sm:$0xff]  ;;  %v1005_v30 = vld [vmem:[%s925_s26 + $0x48] sm:$0xff]  ;;  %v248_v31 = vadd.f32 %v994_v25, %v991_v24  ;;  %v224_v35 = vadd.f32 %v223_v27, %v987_v22  ;;  %p692_p12 = scmp.ne.s32.totalorder %s1122_s6, %s691_s8  ;;  %s769_s14 = smov [#allocation7]  }
  0x54   : > { %v212_v21 = vadd.f32 %v211_v12, %v956_v9  ;;  %v237_v23 = vadd.f32 %v236_v16, %v961_v11  ;;  %v1010_v32 = vld [vmem:[%s925_s26 + $0x70] sm:$0xff]  ;;  %v1014_v34 = vld [vmem:[%s925_s26 + $0xb8] sm:$0xff]  ;;  %v1018_v36 = vld [vmem:[%s925_s26 + $0xe0] sm:$0xff]  ;;  %s695_s16 = sshll.u32 %s769_s14, 4  ;;  %s696_s16 = int_to_ptr.vmem [resolvable:$false] %s695_s16 }
  0x55   : > { %v1022_v38 = vld [vmem:[%s925_s26 + $0x58] sm:$0xff]  ;;  %v249_v39 = vadd.f32 %v248_v31, %v997_v26  ;;  %v1027_v41 = vld [vmem:[%s925_s26 + $0xc8] sm:$0xff]  ;;  %v225_v42 = vadd.f32 %v224_v35, %v1005_v30  ;;  %v1031_v43 = vld [vmem:[%s925_s26 + $0xf0] sm:$0xff]  ;;  %p693_p7 = pnand %p692_p12, %p1197_p13  ;;  %s697_s17 = scalar_lea.vmem %s696_s16, 8192 }
  0x56   : > { %v213_v29 = vadd.f32 %v212_v21, %v971_v15  ;;  %v238_v33 = vadd.f32 %v237_v23, %v983_v20  ;;  %v1035_v45 = vld [vmem:[%s925_s26 + $0x68] sm:$0xff]  ;;  %v1040_v48 = vld [vmem:[%s925_s26 + $0xd8] sm:$0xff]  ;;  %p698_p6 = scmp.lt.s32.totalorder %s1122_s6, %s696_s16  ;;  %p699_p4 = scmp.lt.s32.totalorder %s697_s17, %s691_s8 }
  0x57   : > { %v250_v46 = vadd.f32 %v249_v39, %v1014_v34  ;;  %v226_v49 = vadd.f32 %v225_v42, %v1022_v38  ;;  %v1044_v51 = vld [vmem:[%s925_s26 + $0x78] sm:$0xff]  ;;  %v1049_v54 = vld [vmem:[%s925_s26 + $0xe8] sm:$0xff]  ;;  %p694_p3 = pneg %p693_p7 }
  0x58   : > { %v214_v37 = vadd.f32 %v213_v29, %v980_v19  ;;  %v239_v40 = vadd.f32 %v238_v33, %v1001_v28  ;;  %v1054_v59 = vld [vmem:[%s925_s26 + $0xf8] sm:$0xff]  ;;  %p700_p5 = por %p699_p4, %p698_p6 }
  0x59   : > { %v251_v52 = vadd.f32 %v250_v46, %v1027_v41  ;;  %v227_v55 = vadd.f32 %v226_v49, %v1035_v45  ;;  %1195 = vst [vmem:[#allocation11_spill] sm:$0xff] %v1054_v59 }
  0x5a   : > { %v215_v44 = vadd.f32 %v214_v37, %v1010_v32  ;;  %v240_v47 = vadd.f32 %v239_v40, %v1018_v36  ;;  %p701_p0 = pnand %p700_p5, %p694_p3 }
  0x5b   : > { %v252_v57 = vadd.f32 %v251_v52, %v1040_v48  ;;  %v228_v60 = vadd.f32 %v227_v55, %v1044_v51 }
  0x5c   : > { %v216_v50 = vrot.slane %v215_v44, 4  ;;  %v241_v53 = vadd.f32 %v240_v47, %v1031_v43 }
  0x5d   : > { %v253_v62 = vadd.f32 %v252_v57, %v1049_v54  ;;  %v229_v3 = vrot.slane %v228_v60, 4  ;;  %v265_v57 = vlaneseq }
  0x5e   : > { %v217_v56 = vadd.f32 %v216_v50, %v215_v44  ;;  %v242_v58 = vrot.slane %v241_v53, 4 }
  0x5f   : > { %v254_v10 = vadd.f32 %v253_v62, %v1054_v59  ;;  %v230_v16 = vadd.f32 %v229_v3, %v228_v60  ;;  %v295_v3 = vstv %s292_s29 }
  0x60   : > { %v218_v61 = vrot.slane %v217_v56, 2  ;;  %v243_v63 = vadd.f32 %v242_v58, %v241_v53  ;;  %v266_v58 = vand.u32 127, %v265_v57 }
  0x61   : > { %v255_v21 = vrot.slane %v254_v10, 4  ;;  %v231_v27 = vrot.slane %v230_v16, 2 }
  0x62   : > { %v219_v8 = vadd.f32 %v218_v61, %v217_v56  ;;  %v244_v12 = vrot.slane %v243_v63, 2  ;;  %v267_v62 = vadd.s32 128, %v266_v58  ;;  %vm314_vm1 = vcmp.lt.s32.totalorder %v266_v58, 127 }
  0x63   : > { %v256_v31 = vadd.f32 %v255_v21, %v254_v10  ;;  %v232_v35 = vadd.f32 %v231_v27, %v230_v16  ;;  %vm287_vm2 = vcmp.lt.s32.totalorder %v266_v58, 1  ;;  %vm290_vm4 = vcmp.ge.s32.totalorder %v266_v58, 1 }
  0x64   : > { %v220_v18 = vrot.slane %v219_v8, 1  ;;  %v245_v23 = vadd.f32 %v244_v12, %v243_v63  ;;  %v269_v63 = vstv %s553_s19  ;;  %vm318_vm3 = vcmp.lt.s32.totalorder %v267_v62, 255 }
  0x65   : > { %v257_v37 = vrot.slane %v256_v31, 2  ;;  %v233_v42 = vrot.slane %v232_v35, 1  ;;  %v322_v10 = vstv %s554_s30 }
  0x66   : > { %v221_v29 = vadd.f32 %v220_v18, %v219_v8  ;;  %v246_v33 = vrot.slane %v245_v23, 1 }
  0x67   : > { %v258_v44 = vadd.f32 %v257_v37, %v256_v31  ;;  %v234_v47 = vadd.f32 %v233_v42, %v232_v35 }
  0x68   : > { %v247_v39 = vadd.f32 %v246_v33, %v245_v23  ;;  %v261_v40 = vmul.f32 0.015625, %v221_v29 }
  0x69   : > { %v259_v49 = vrot.slane %v258_v44, 1  ;;  %v262_v53 = vmul.f32 0.015625, %v234_v47 }
  0x6a   : > { %v263_v46 = vmul.f32 0.015625, %v247_v39  ;;  %v270_v8 = vmul.f32 %v269_v63, %v261_v40 }
  0x6b   : > { %v260_v52 = vadd.f32 %v259_v49, %v258_v44  ;;  %v271_v16 = vmul.f32 %v269_v63, %v262_v53 }
  0x6c   : > { %v279_v50 = vsel %vm278_vm0, %v263_v46, %v261_v40  ;;  %v272_v39 = vmul.f32 %v269_v63, %v263_v46 }
  0x6d   : > { %310 = vrot.lane.b32.xlu1 %v279_v50, %s767_s20  ;;  %283 = vrot.lane.b32.xlu0 %v279_v50, %s768_s23  ;;  %v264_v55 = vmul.f32 0.015625, %v260_v52 }
  0x6f   : > { %v280_v56 = vsel %vm278_vm0, %v264_v55, %v262_v53  ;;  %v273_v31 = vmul.f32 %v269_v63, %v264_v55 }
  0x71   : > { %312 = vrot.lane.b32.xlu1 %v280_v56, %s767_s20  ;;  %285 = vrot.lane.b32.xlu0 %v280_v56, %s768_s23 }
  0xdf   : > { %v311_v60 = vpop.permute.xlu1 %310  ;;  %v284_v61 = vpop.permute.xlu0 %283 }
  0xe3   : > { %v313_v12 = vpop.permute.xlu1 %312  ;;  %v286_v18 = vpop.permute.xlu0 %285 }
  0xe4   : > { %v315_v21 = vsel %vm314_vm1, %v311_v60, %v313_v12  ;;  %v316_v23 = vsel %vm314_vm1, %v313_v12, %v311_v60  ;;  %v288_v27 = vsel %vm287_vm2, %v284_v61, %v286_v18  ;;  %v289_v29 = vsel %vm287_vm2, %v286_v18, %v284_v61 }
  0xe5   : > { %v321_v33 = vsel %vm318_vm3, %v316_v23, 0.0  ;;  %v293_v35 = vsel %vm290_vm4, %v289_v29, 0.0  ;;  %v297_v37 = vmul.f32 %v295_v3, %v288_v27  ;;  %v323_v42 = vmul.f32 %v322_v10, %v315_v21 }
  0xe6   : > { %v324_v44 = vmul.f32 %v322_v10, %v321_v33  ;;  %v296_v47 = vmul.f32 %v295_v3, %v293_v35 }
  0xe7   : > { %v301_v49 = vrot.slane %v297_v37, 1  ;;  %v307_v50 = vadd.f32 %v297_v37, %v271_v16  ;;  %v327_v62 = vrot.slane %v323_v42, 1 }
  0xe8   : > { %v328_v52 = vrot.slane %v324_v44, 1  ;;  %v300_v40 = vrot.slane %v296_v47, 1  ;;  %v306_v56 = vadd.f32 %v296_v47, %v270_v8 }
  0xe9   : > { %v309_v58 = vadd.f32 %v301_v49, %v273_v31  ;;  %v334_v53 = vadd.f32 %v324_v44, %v307_v50  ;;  %v362_v31 = vshrl.u32 %v265_v57, 7 }
  0xea   : > { %v308_v59 = vadd.f32 %v300_v40, %v272_v39  ;;  %v333_v60 = vadd.f32 %v323_v42, %v306_v56 }
  0xeb   : > { %v336_v12 = vadd.f32 %v328_v52, %v309_v58  ;;  %v556_v61 = vmul.f32 -1.442695, %v334_v53 }
  0xec   : > { %v335_v55 = vadd.f32 %v327_v62, %v308_v59  ;;  %v555_v18 = vmul.f32 -1.442695, %v333_v60  ;;  %v363_v59 = vsub.s32 0, %v362_v31 }
  0xed   : > { %632 = vpow2.f32 %v556_v61  ;;  %v558_v23 = vmul.f32 -1.442695, %v336_v12 }
  0xee   : > { %634 = vpow2.f32 %v555_v18  ;;  %v557_v46 = vmul.f32 -1.442695, %v335_v55 }
  0xef   : > { %636 = vpow2.f32 %v558_v23 }
  0xf0   : > { %638 = vpow2.f32 %v557_v46 }
  0xf7   : > { %v633_v63 = vpop.eup %632 }
  0xf8   : > { %v635_v3 = vpop.eup %634  ;;  %v350_v10 = vadd.f32 1.0, %v633_v63 }
  0xf9   : > { %v637_v16 = vpop.eup %636  ;;  %v349_v8 = vadd.f32 1.0, %v635_v3 }
  0xfa   : > { %v639_v21 = vpop.eup %638  ;;  %v352_v27 = vadd.f32 1.0, %v637_v16  ;;  %640 = vrcp.f32 %v350_v10 }
  0xfb   : > { %v351_v29 = vadd.f32 1.0, %v639_v21  ;;  %642 = vrcp.f32 %v349_v8 }
  0xfc   : > { %644 = vrcp.f32 %v352_v27 }
  0xfd   : > { %646 = vrcp.f32 %v351_v29 }
 0x104   : > { %v641_v33 = vpop.eup %640 }
 0x105   : > { %v643_v35 = vpop.eup %642  ;;  %v368_v37 = vrot.slane %v641_v33, %v363_v59 }
 0x106   : > { %v645_v39 = vpop.eup %644  ;;  %v364_v42 = vrot.slane %v643_v35, %v363_v59 }
 0x107   : > { %v647_v44 = vpop.eup %646  ;;  %v376_v47 = vrot.slane %v645_v39, %v363_v59  ;;  %v378_v49 = vmul.f32 %v368_v37, %v965_v13  ;;  %v380_v50 = vmul.f32 %v368_v37, %v968_v14  ;;  %v382_v52 = vmul.f32 %v368_v37, %v975_v17 }
 0x108   : > { %v372_v40 = vrot.slane %v647_v44, %v363_v59  ;;  %v377_v56 = vmul.f32 %v364_v42, %v932_v0  ;;  %v379_v57 = vmul.f32 %v364_v42, %v935_v1  ;;  %v381_v58 = vmul.f32 %v364_v42, %v938_v2 }
 0x109   : > { %v383_v53 = vmul.f32 %v364_v42, %v943_v4  ;;  %v384_v62 = vmul.f32 %v368_v37, %v987_v22  ;;  %v385_v60 = vmul.f32 %v364_v42, %v956_v9  ;;  %v386_v12 = vmul.f32 %v368_v37, %v1005_v30  ;;  %410 = vst [vmem:[%s1071_s4 + $0x8] sm:$0xff] %v378_v49 }
 0x10a   : > { %412 = vst [vmem:[%s1071_s4 + $0x18] sm:$0xff] %v380_v50  ;;  %414 = vst [vmem:[%s1071_s4 + $0x28] sm:$0xff] %v382_v52  ;;  %v387_v0 = vmul.f32 %v364_v42, %v971_v15  ;;  %v388_v1 = vmul.f32 %v368_v37, %v1022_v38  ;;  %v389_v2 = vmul.f32 %v364_v42, %v980_v19 }
 0x10b   : > { %v390_v4 = vmul.f32 %v368_v37, %v1035_v45  ;;  %409 = vst [vmem:[%s1071_s4] sm:$0xff] %v377_v56  ;;  %411 = vst [vmem:[%s1071_s4 + $0x10] sm:$0xff] %v379_v57  ;;  %v391_v9 = vmul.f32 %v364_v42, %v1010_v32  ;;  %v392_v13 = vmul.f32 %v368_v37, %v1044_v51  ;;  %v1196_v32 = vld [vmem:[#allocation11_spill] sm:$0xff] }
 0x10c   : > { %413 = vst [vmem:[%s1071_s4 + $0x20] sm:$0xff] %v381_v58  ;;  %v393_v14 = vmul.f32 %v372_v40, %v946_v5  ;;  %v394_v15 = vmul.f32 %v376_v47, %v991_v24  ;;  %415 = vst [vmem:[%s1071_s4 + $0x30] sm:$0xff] %v383_v53  ;;  %v395_v17 = vmul.f32 %v372_v40, %v949_v6 }
 0x10d   : > { %416 = vst [vmem:[%s1071_s4 + $0x38] sm:$0xff] %v384_v62  ;;  %417 = vst [vmem:[%s1071_s4 + $0x40] sm:$0xff] %v385_v60  ;;  %v396_v19 = vmul.f32 %v376_v47, %v994_v25  ;;  %v397_v22 = vmul.f32 %v372_v40, %v952_v7  ;;  %v398_v5 = vmul.f32 %v376_v47, %v997_v26 }
 0x10e   : > { %418 = vst [vmem:[%s1071_s4 + $0x48] sm:$0xff] %v386_v12  ;;  %419 = vst [vmem:[%s1071_s4 + $0x50] sm:$0xff] %v387_v0  ;;  %v399_v24 = vmul.f32 %v372_v40, %v961_v11  ;;  %v400_v30 = vmul.f32 %v376_v47, %v1014_v34  ;;  %v401_v6 = vmul.f32 %v372_v40, %v983_v20 }
 0x10f   : > { %420 = vst [vmem:[%s1071_s4 + $0x58] sm:$0xff] %v388_v1  ;;  %421 = vst [vmem:[%s1071_s4 + $0x60] sm:$0xff] %v389_v2  ;;  %v402_v25 = vmul.f32 %v376_v47, %v1027_v41  ;;  %v403_v7 = vmul.f32 %v372_v40, %v1001_v28  ;;  %v404_v26 = vmul.f32 %v376_v47, %v1040_v48 }
 0x110   : > { %422 = vst [vmem:[%s1071_s4 + $0x68] sm:$0xff] %v390_v4  ;;  %423 = vst [vmem:[%s1071_s4 + $0x70] sm:$0xff] %v391_v9  ;;  %v405_v11 = vmul.f32 %v372_v40, %v1018_v36  ;;  %v406_v20 = vmul.f32 %v376_v47, %v1049_v54  ;;  %v407_v28 = vmul.f32 %v372_v40, %v1031_v43 }
 0x111   : > { %424 = vst [vmem:[%s1071_s4 + $0x78] sm:$0xff] %v392_v13  ;;  %425 = vst [vmem:[%s1071_s4 + $0x80] sm:$0xff] %v393_v14  ;;  %v408_v34 = vmul.f32 %v376_v47, %v1196_v32 }
 0x112   : > { %426 = vst [vmem:[%s1071_s4 + $0x88] sm:$0xff] %v394_v15  ;;  %427 = vst [vmem:[%s1071_s4 + $0x90] sm:$0xff] %v395_v17 }
 0x113   : > { %428 = vst [vmem:[%s1071_s4 + $0x98] sm:$0xff] %v396_v19  ;;  %429 = vst [vmem:[%s1071_s4 + $0xa0] sm:$0xff] %v397_v22 }
 0x114   : > { %430 = vst [vmem:[%s1071_s4 + $0xa8] sm:$0xff] %v398_v5  ;;  %431 = vst [vmem:[%s1071_s4 + $0xb0] sm:$0xff] %v399_v24 }
 0x115   : > { %432 = vst [vmem:[%s1071_s4 + $0xb8] sm:$0xff] %v400_v30  ;;  %433 = vst [vmem:[%s1071_s4 + $0xc0] sm:$0xff] %v401_v6 }
 0x116   : > { %434 = vst [vmem:[%s1071_s4 + $0xc8] sm:$0xff] %v402_v25  ;;  %435 = vst [vmem:[%s1071_s4 + $0xd0] sm:$0xff] %v403_v7 }
 0x117   : > { %436 = vst [vmem:[%s1071_s4 + $0xd8] sm:$0xff] %v404_v26  ;;  %437 = vst [vmem:[%s1071_s4 + $0xe0] sm:$0xff] %v405_v11 }
 0x118   : > { %438 = vst [vmem:[%s1071_s4 + $0xe8] sm:$0xff] %v406_v20  ;;  %439 = vst [vmem:[%s1071_s4 + $0xf0] sm:$0xff] %v407_v28 }
 0x119   : > { %440 = vst [vmem:[%s1071_s4 + $0xf8] sm:$0xff] %v408_v34 }
 0x11a   : > { %704 = shalt.err (!%p701_p0)
}
 0x11b   : > { %s705_s3 = scalar_lea.hbm %s1120_s24, 4096  ;;  %s709_s20 = scalar_lea.hbm %s1180_s2, 8192 }
 0x11c   : > { %p706_p8 = scmp.ne.s32.totalorder %s1120_s24, %s705_s3  ;;  %p710_p1 = scmp.lt.u32.totalorder %s1120_s24, %s1180_s2 }
 0x11d   : > { %p711_p2 = scmp.lt.u32.totalorder %s709_s20, %s705_s3  ;;  %p713_p12 = scmp.lt.u32.totalorder %s705_s3, %s1120_s24 }
 0x11e   : > { %p707_p9 = pnand %p706_p8, %p1197_p13 }
 0x11f   : > { %p712_p11 = por %p711_p2, %p710_p1 }
 0x120   : > { %p708_p10 = pneg %p707_p9 }
 0x121   : > { %p714_p7 = por %p713_p12, %p712_p11 }
 0x123   : > { %p715_p3 = pnand %p714_p7, %p708_p10 }
 0x125   : > { %718 = shalt.err (!%p715_p3)
}
 0x126   : > { %s770_s29 = smov 256   ;;  %s771_s30 = smov 16  }
 0x127   : > { %575 = dma.vmem_to_hbm [thread:$0]  (%p1197_p13), %s1122_s6, 4096, %s1120_s24, %s442_s27, %s770_s29, %s770_s29, %s771_s30  }
 0x128 PF: > { %s471_s4 = sand.u32 1, %s749_s9   ;;  %p1198_p6 = scmp.ne.s32.totalorder %s1188_s22, 0 }
 0x129   : > { %p1199_p4 = scmp.ge.s32.totalorder %s761_s12, 2  ;;  %s472_s5 = scalar_lea.sflag [#allocation4], %s471_s4 }
 0x12b   : > { %p586_p5 = pnand %p1199_p4, %p1198_p6 }
 0x12d   : > { %744 = dma.done.wait (!%p586_p5), %s472_s5, 4096  }
 0x12e   : > { %746 = vsyncadd (!%p586_p5), %s472_s5, 4294963200  ;;  %p16_p0 = scmp.ge.s32.totalorder %s812_s15, 4   ;;  %s1200_s9 = smov %s753_s10 }
 0x12f   : > { %s1201_s10 = smov %s757_s11  ;;  %s1202_s11 = smov %s824_s18 }
 0x130   : > { %s1203_s12 = smov %s812_s15  ;;  %18 = sbr.rel (!%p16_p0) target bundleno = 6 (0x6), region = 78 }
 0x137   :  { %477 = vsyncpa [#allocation3], 1 }
 0x138   :  { %479 = vsyncpa [#allocation3 + $0x1], 1 }
 0x139   :  { %480 = vsyncpa [#allocation4], 1 }
 0x13a   :  { %482 = vsyncpa [#allocation4 + $0x1], 1 }
 0x13b   :  { %483 = vsyncpa [#allocation5], 1 }
 0x13c   :  { %485 = vsyncpa [#allocation5 + $0x1], 1 }

</bundles_post_ra>
